<compile_context>
chip_gen: v7x
topology: tpu7x:2x2x1
jax: 0.10.0
libtpu: 0.0.40
codegen_flags: <defaults>
</compile_context>

<pallas_src>
import functools

import jax
import jax.numpy as jnp
from jax.experimental import pallas as pl
from jax.experimental.pallas import tpu as pltpu


def _qa_loss_kernel(q_ref, p_ref, n_ref, hinge_ref, *, margin):
    """One grid step: per-row hinge loss for a (tile_b, D) batch tile."""
    q = q_ref[...].astype(jnp.float32)
    diff = n_ref[...].astype(jnp.float32) - p_ref[...].astype(jnp.float32)
    # hinge = max(0, margin - <q, pos> + <q, neg>) = max(0, margin + <q, neg - pos>)
    s = jnp.sum(q * diff, axis=1, keepdims=True)            # (tile_b, 1)
    hinge_ref[...] = jnp.maximum(jnp.float32(0.0), s + jnp.float32(margin))


def _pick_tile_b(B, D, dtype_bytes, vmem_budget_bytes=24 << 20):
    """Largest batch tile so 3 inputs x 2 buffers x tile_b x D fits the budget."""
    max_rows = max(8, vmem_budget_bytes // (3 * 2 * D * dtype_bytes))
    cap = min(B, max_rows, 2048)
    # Prefer the largest divisor of B <= cap that is a multiple of 8 (keeps the
    # (tile_b, 1) output block sublane-aligned); fall back to any divisor; then B.
    best = None
    for t in range(cap, 0, -1):
        if B % t == 0:
            if t % 8 == 0 or t == B:
                return t
            if best is None:
                best = t
    return best if best is not None else B


def qa_loss(question, positive, negative, margin, *, tile_b=None):
    B, D = question.shape
    dtype_bytes = jnp.dtype(question.dtype).itemsize
    if tile_b is None:
        tile_b = _pick_tile_b(B, D, dtype_bytes)
    assert B % tile_b == 0, "batch must be divisible by tile_b"

    kernel = functools.partial(_qa_loss_kernel, margin=float(margin))

    in_spec = pl.BlockSpec((tile_b, D), lambda i: (i, 0))
    hinge = pl.pallas_call(
        kernel,
        out_shape=jax.ShapeDtypeStruct((B, 1), jnp.float32),
        grid_spec=pltpu.PrefetchScalarGridSpec(
            num_scalar_prefetch=0,
            grid=(B // tile_b,),
            in_specs=[in_spec, in_spec, in_spec],
            out_specs=pl.BlockSpec((tile_b, 1), lambda i: (i, 0)),
        ),
        compiler_params=pltpu.CompilerParams(
            # Independent grid steps -> can be sharded across TensorCores (v7x).
            dimension_semantics=("parallel",),
            # Explicit scoped-VMEM limit: safe on v5e/v6e (128 MiB phys) and
            # v7x (64 MiB phys); tile sizing above stays well under it.
            vmem_limit_bytes=32 << 20,
        ),
    )(question, positive, negative)

    # Tiny final reduction (B scalars) done outside the kernel.
    return jnp.mean(hinge)


def qa_loss_ref(question, positive, negative, margin):
    q = question.astype(jnp.float32)
    pos = jnp.sum(q * positive.astype(jnp.float32), axis=1)
    neg = jnp.sum(q * negative.astype(jnp.float32), axis=1)
    return jnp.mean(jnp.maximum(0.0, margin - pos + neg))


if __name__ == "__main__":
    key = jax.random.PRNGKey(0)
    kq, kp, kn = jax.random.split(key, 3)

    B, D = 16, 128  # small embedding-like shapes
    margin = 0.5

    question = jax.random.normal(kq, (B, D), dtype=jnp.float32)
    positive = jax.random.normal(kp, (B, D), dtype=jnp.float32)
    negative = jax.random.normal(kn, (B, D), dtype=jnp.float32)

    loss = qa_loss(question, positive, negative, margin)
    loss = jax.block_until_ready(loss)

    ref = qa_loss_ref(question, positive, negative, margin)
    assert jnp.allclose(loss, ref, rtol=1e-5, atol=1e-5), (loss, ref)

    print("KERNEL_OK")
</pallas_src>

<mosaic_0001>
module attributes {stable_mosaic.version = 11 : i64} {
  func.func @_qa_loss_kernel(%arg0: i32, %arg1: memref<16x128xf32, #tpu.memory_space<vmem>>, %arg2: memref<16x128xf32, #tpu.memory_space<vmem>>, %arg3: memref<16x128xf32, #tpu.memory_space<vmem>>, %arg4: memref<16x1xf32, #tpu.memory_space<vmem>>) attributes {dimension_semantics = [#tpu.dimension_semantics<parallel>], iteration_bounds = array<i64: 1>, scalar_prefetch = 0 : i64, scratch_operands = 0 : i64, tpu.core_type = #tpu.core_type<tc>, window_params = [{transform_indices = @transform_0, window_bounds = array<i64: 16, 128>}, {transform_indices = @transform_1, window_bounds = array<i64: 16, 128>}, {transform_indices = @transform_2, window_bounds = array<i64: 16, 128>}, {transform_indices = @transform_3, window_bounds = array<i64: 16, 1>}]} {
    %c0 = arith.constant 0 : index
    %c0_0 = arith.constant 0 : index
    %0 = vector.load %arg1[%c0, %c0_0] : memref<16x128xf32, #tpu.memory_space<vmem>>, vector<16x128xf32>
    %c0_1 = arith.constant 0 : index
    %c0_2 = arith.constant 0 : index
    %1 = vector.load %arg3[%c0_1, %c0_2] : memref<16x128xf32, #tpu.memory_space<vmem>>, vector<16x128xf32>
    %c0_3 = arith.constant 0 : index
    %c0_4 = arith.constant 0 : index
    %2 = vector.load %arg2[%c0_3, %c0_4] : memref<16x128xf32, #tpu.memory_space<vmem>>, vector<16x128xf32>
    %3 = arith.subf %1, %2 : vector<16x128xf32>
    %4 = arith.mulf %0, %3 : vector<16x128xf32>
    %cst = arith.constant dense<0.000000e+00> : vector<16xf32>
    %5 = vector.multi_reduction <add>, %4, %cst [1] : vector<16x128xf32> to vector<16xf32>
    %6 = vector.shape_cast %5 : vector<16xf32> to vector<16x1xf32>
    %cst_5 = arith.constant 5.000000e-01 : f32
    %7 = vector.broadcast %cst_5 : f32 to vector<16x1xf32>
    %8 = arith.addf %6, %7 : vector<16x1xf32>
    %cst_6 = arith.constant 0.000000e+00 : f32
    %9 = vector.broadcast %cst_6 : f32 to vector<16x1xf32>
    %10 = arith.maximumf %9, %8 : vector<16x1xf32>
    %c0_7 = arith.constant 0 : index
    %c0_8 = arith.constant 0 : index
    %11 = vector.load %arg4[%c0_7, %c0_8] : memref<16x1xf32, #tpu.memory_space<vmem>>, vector<16x1xf32>
    tpu.vector_store %arg4[%c0_7, %c0_8], %10 {strides = array<i32>} : memref<16x1xf32, #tpu.memory_space<vmem>>, vector<16x1xf32>,
    return
  }
  func.func @transform_0(%arg0: i32) -> (i32, i32) {
    %c0_i32 = arith.constant 0 : i32
    %c0_i32_0 = arith.constant 0 : i32
    return %arg0, %c0_i32 : i32, i32
  }
  func.func @transform_1(%arg0: i32) -> (i32, i32) {
    %c0_i32 = arith.constant 0 : i32
    %c0_i32_0 = arith.constant 0 : i32
    return %arg0, %c0_i32 : i32, i32
  }
  func.func @transform_2(%arg0: i32) -> (i32, i32) {
    %c0_i32 = arith.constant 0 : i32
    %c0_i32_0 = arith.constant 0 : i32
    return %arg0, %c0_i32 : i32, i32
  }
  func.func @transform_3(%arg0: i32) -> (i32, i32) {
    %c0_i32 = arith.constant 0 : i32
    %c0_i32_0 = arith.constant 0 : i32
    return %arg0, %c0_i32 : i32, i32
  }
}

</mosaic_0001>

<bundles_post_ra>
// kernel: tpu_custom_call.1
= control target key start
LH: loop header
LB: loop body
LE: loop exit
PB: predicated region body
PF: predicated region fallthrough
CT: control target
= control target key end

     0   :  { %8 = vsyncpa [#allocation3], 0  ;;  %s240_s0 = inlined_call_operand.hbm [shape: f32[16,128], index: 0, kind: input, shape index: {}]   ;;  %s241_s1 = inlined_call_operand.hbm [shape: f32[16,128], index: 1, kind: input, shape index: {}]   ;;  %s242_s2 = inlined_call_operand.hbm [shape: f32[16,128], index: 2, kind: input, shape index: {}]   ;;  %s243_s3 = inlined_call_operand.vmem [shape: f32[16,1], index: 3, kind: output, shape index: {}]  }
   0x1   :  { %9 = vsyncpa [#allocation5], 0  ;;  %s157_s12 = smov [#allocation4]   ;;  %s158_s14 = smov [#allocation2]  }
   0x2   :  { %s27_s13 = sshll.u32 %s157_s12, 4  ;;  %s15_s15 = sshll.u32 %s158_s14, 4  ;;  %s28_s13 = int_to_ptr.vmem [resolvable:$true] %s27_s13  ;;  %s182_s15 = int_to_ptr.vmem [resolvable:$true] %s15_s15 }
   0x3   :  { %s87_s18 = scalar_lea.hbm %s241_s1, 256 }
   0x4   :  { %p88_p0 = scmp.ne.s32.totalorder %s241_s1, %s87_s18  ;;  %p91_p1 = scmp.lt.u32.totalorder %s87_s18, %s241_s1 }
   0x6   :  { %p93_p2 = pnand %p91_p1, %p88_p0 }
   0x8   :  { %96 = shalt.err (!%p93_p2)
}
   0x9   :  { %s97_s23 = scalar_lea.vmem %s28_s13, 256  ;;  %p102_p4 = scmp.lt.s32.totalorder %s28_s13, %s28_s13 }
   0xa   :  { %p98_p3 = scmp.ne.s32.totalorder %s28_s13, %s97_s23  ;;  %p103_p5 = scmp.lt.s32.totalorder %s97_s23, %s97_s23 }
   0xc   :  { %p104_p6 = por %p103_p5, %p102_p4 }
   0xe   :  { %p105_p7 = pnand %p104_p6, %p98_p3 }
  0x10   :  { %108 = shalt.err (!%p105_p7)
}
  0x11   :  { %s159_s24 = smov 128   ;;  %s160_s25 = smov 8  }
  0x12   :  { %33 = dma.hbm_to_vmem [thread:$0]  %s241_s1, 256, %s28_s13, [#allocation5], %s159_s24, %s159_s24, %s160_s25  }
  0x13   :  { %s109_s30 = scalar_lea.hbm %s240_s0, 256 }
  0x14   :  { %p110_p8 = scmp.ne.s32.totalorder %s240_s0, %s109_s30  ;;  %p113_p9 = scmp.lt.u32.totalorder %s109_s30, %s240_s0 }
  0x16   :  { %p115_p10 = pnand %p113_p9, %p110_p8 }
  0x18   :  { %118 = shalt.err (!%p115_p10)
}
  0x19   :  { %s119_s8 = scalar_lea.vmem %s182_s15, 256  ;;  %p124_p12 = scmp.lt.s32.totalorder %s182_s15, %s182_s15 }
  0x1a   :  { %p120_p11 = scmp.ne.s32.totalorder %s182_s15, %s119_s8  ;;  %p125_p13 = scmp.lt.s32.totalorder %s119_s8, %s119_s8 }
  0x1c   :  { %p126_p0 = por %p125_p13, %p124_p12 }
  0x1e   :  { %p127_p1 = pnand %p126_p0, %p120_p11 }
  0x20   :  { %130 = shalt.err (!%p127_p1)
}
  0x21   :  { %21 = dma.hbm_to_vmem [thread:$0]  %s240_s0, 256, %s182_s15, [#allocation3], %s159_s24, %s159_s24, %s160_s25  }
  0x22   :  { %s161_s10 = smov [#allocation6]   ;;  %s131_s14 = scalar_lea.hbm %s242_s2, 256 }
  0x23   :  { %s39_s11 = sshll.u32 %s161_s10, 4  ;;  %p132_p2 = scmp.ne.s32.totalorder %s242_s2, %s131_s14  ;;  %s40_s11 = int_to_ptr.vmem [resolvable:$true] %s39_s11 }
  0x24   :  { %p135_p3 = scmp.lt.u32.totalorder %s131_s14, %s242_s2 }
  0x26   :  { %p137_p4 = pnand %p135_p3, %p132_p2 }
  0x28   :  { %140 = shalt.err (!%p137_p4)
}
  0x29   :  { %s141_s20 = scalar_lea.vmem %s40_s11, 256  ;;  %p146_p6 = scmp.lt.s32.totalorder %s40_s11, %s40_s11 }
  0x2a   :  { %p142_p5 = scmp.ne.s32.totalorder %s40_s11, %s141_s20  ;;  %p147_p7 = scmp.lt.s32.totalorder %s141_s20, %s141_s20 }
  0x2c   :  { %p148_p8 = por %p147_p7, %p146_p6 }
  0x2e   :  { %p149_p9 = pnand %p148_p8, %p142_p5 }
  0x30   :  { %152 = shalt.err (!%p149_p9)
}
  0x31   :  { %45 = dma.hbm_to_vmem [thread:$0]  %s242_s2, 256, %s40_s11, [#allocation5], %s159_s24, %s159_s24, %s160_s25  }
  0x32   :  { %153 = dma.done.wait [#allocation3], 256  }
  0x33   :  { %154 = vsyncadd [#allocation3], 4294967040 }
  0x34   :  { %155 = dma.done.wait [#allocation5], 512  }
  0x35   :  { %156 = vsyncadd [#allocation5], 4294966784  ;;  %v55_v0 = vld [vmem:[#allocation2] sm:$0xff]  ;;  %v59_v2 = vld [vmem:[#allocation4] sm:$0xff]  ;;  %vm73_vm0 = vcmask 7168  }
  0x36   :  { %v57_v1 = vld [vmem:[#allocation6] sm:$0xff]  ;;  %v58_v4 = vld [vmem:[#allocation6 + $0x8] sm:$0xff]  ;;  %v60_v5 = vld [vmem:[#allocation4 + $0x8] sm:$0xff] }
  0x37   :  { %v61_v3 = vsub.f32 %v57_v1, %v59_v2  ;;  %v56_v6 = vld [vmem:[#allocation2 + $0x8] sm:$0xff]  ;;  %v62_v7 = vsub.f32 %v58_v4, %v60_v5 }
  0x39   :  { %v63_v8 = vmul.f32 %v61_v3, %v55_v0  ;;  %v64_v9 = vmul.f32 %v62_v7, %v56_v6 }
  0x3b   :  { %65 = vadd.xlane.f32.xlu0 %v63_v8 }
  0x3f   :  { %67 = vadd.xlane.f32.xlu0 %v64_v9 }
  0xc8   :  { %v66_v10 = vpop.xlane.xlu0 %65 }
  0xc9   :  { %v69_v11 = vadd.f32 0.5, %v66_v10 }
  0xcb   :  { %v71_v12 = vmax.f32 %v69_v11, 0.0 }
  0xcc   :  { %v68_v13 = vpop.xlane.xlu0 %67 }
  0xcd   :  { %74 = vst.msk [vmem:[%s243_s3] sm:$0xff] %vm73_vm0, %v71_v12  ;;  %v70_v14 = vadd.f32 0.5, %v68_v13 }
  0xcf   :  { %v72_v15 = vmax.f32 %v70_v14, 0.0 }
  0xd1   :  { %75 = vst.msk [vmem:[%s243_s3 + $0x8] sm:$0xff] %vm73_vm0, %v72_v15 }
  0xd2   :  { %80 = vsyncpa [#allocation3], 1 }
  0xd3   :  { %81 = vsyncpa [#allocation5], 1 }

</bundles_post_ra>
